<compile_context>
chip_gen: v7x
topology: tpu7x:2x2x1
jax: 0.10.0
libtpu: 0.0.40
codegen_flags: <defaults>
</compile_context>

<pallas_src>
import functools

import jax
import jax.numpy as jnp
from jax import lax
from jax.experimental import pallas as pl
from jax.experimental.pallas import tpu as pltpu


def _round_up(v, m):
    return (v + m - 1) // m * m


def _choose_tt(t_total, b_blk, h_pad, xp_itemsize, out_itemsize,
               tt_cap, budget_bytes):
    """Pick timesteps-per-chunk from a VMEM budget (v7x-safe, large on v5e/v6e)."""
    t_ceil8 = _round_up(t_total, 8)
    # revolving (double-buffered) bytes per pipelined timestep
    per_step = (b_blk * 2 * h_pad * xp_itemsize * 2      # xp block (2 buffers)
                + b_blk * h_pad * out_itemsize * 2)      # out block (2 buffers)
    fixed = (h_pad * 2 * h_pad * xp_itemsize             # resident fused Wh (1 copy)
             + 2 * b_blk * h_pad * 4                     # h0 block
             + 2 * b_blk * h_pad * 4                     # hfin block
             + b_blk * h_pad * 4)                        # f32 hidden-state scratch
    tt_fit = max((budget_bytes - fixed) // per_step, 8)
    tt = int(min(max(tt_cap, 8), tt_fit, t_ceil8))
    tt = max(8, (tt // 8) * 8)                           # sublane-aligned chunk
    return tt, per_step, fixed


def _mingru_recurrent_kernel(xp_ref, h0_ref, whf_ref,
                             out_ref, hfin_ref, h_scratch,
                             *, tt, t_total, h_pad, mask_start,
                             static_unroll, dyn_unroll):
    """One grid step == one (batch block, time chunk).

    xp_ref   : (tt, Bblk, 2*Hp)  precomputed x-projections (+bias) [z | o]
    h0_ref   : (Bblk, Hp) f32    initial hidden state
    whf_ref  : (Hp, 2*Hp)        fused hidden weights [Wzh | Woh], resident VMEM
    out_ref  : (Bblk, tt, Hp)    hidden states, written batch-major
    hfin_ref : (Bblk, Hp) f32    final hidden state (written at last chunk)
    h_scratch: (Bblk, Hp) f32    hidden state carried across time chunks
    """
    c = pl.program_id(1)            # time-chunk index (sequential axis)

    @pl.when(c == 0)
    def _():
        h_scratch[...] = h0_ref[...].astype(jnp.float32)

    whf = whf_ref[...]              # stays resident for every step of the chunk

    def step(i, h, maybe_masked):
        xp = xp_ref[i].astype(jnp.float32)                       # (Bblk, 2*Hp)
        # Single small MXU dot on the serial critical path: bf16 operands,
        # f32 accumulate.  Gate math stays f32 (v5e VPU/EUP have no bf16).
        pre = xp + jnp.dot(h.astype(whf.dtype), whf,
                           preferred_element_type=jnp.float32)
        z = jax.nn.sigmoid(pre[:, :h_pad])
        h_tilde = jnp.tanh(pre[:, h_pad:])
        h_new = h + z * (h_tilde - h)            # == (1 - z) * h + z * h_tilde
        if maybe_masked:                         # ragged tail of the padded T
            valid = (c * tt + i) < t_total
            h_new = jnp.where(valid, h_new, h)
        out_ref[:, i, :] = h_new.astype(out_ref.dtype)  # batch-major row store
        return h_new

    if static_unroll:
        # Fully unrolled at trace time: static store indices, no loop overhead.
        h_last = h_scratch[...]
        for i in range(tt):
            h_last = step(i, h_last, maybe_masked=(i >= mask_start))
    else:
        # Partial unroll keeps LLO scheduling visibility without vreg blowup.
        h_last = lax.fori_loop(
            0, tt, lambda i, h: step(i, h, maybe_masked=(mask_start < tt)),
            h_scratch[...], unroll=dyn_unroll)

    h_scratch[...] = h_last

    @pl.when(c == pl.num_programs(1) - 1)
    def _():
        hfin_ref[...] = h_last      # emit final hidden state from f32 carry


@functools.partial(
    jax.jit,
    static_argnames=("tt_cap", "compute_dtype", "vmem_budget_bytes",
                     "static_unroll_limit"))
def mingru_layer(x, params, hidden=None, *, tt_cap=128,
                 compute_dtype=jnp.bfloat16,
                 vmem_budget_bytes=24 * 1024 * 1024,
                 static_unroll_limit=64):
    """MinGRULayer forward (batch_first=True).

    x       : (B, T, I) float32
    params  : dict with w_z (H, I+H), b_z (H,), w_o (H, I+H), b_o (H,)
              — same shapes as nn.Linear(input+hidden, hidden).
    hidden  : optional (B, H) initial hidden state; zeros if None.

    Returns (outputs (B, T, H), hidden_final (B, H)).
    """
    B, T, I = x.shape
    w_z, b_z = params["w_z"], params["b_z"]
    w_o, b_o = params["w_o"], params["b_o"]
    H = w_z.shape[0]

    if hidden is None:
        hidden = jnp.zeros((B, H), dtype=x.dtype)

    compute_dtype = jnp.dtype(compute_dtype)
    out_dtype = x.dtype

    # --- padding: f32 sublanes (8) on batch, lanes (128) on hidden -----------
    B_pad = _round_up(B, 8)
    H_pad = _round_up(H, 128)
    # Split the batch into two blocks when possible so v7x's 2 TensorCores can
    # run the (embarrassingly parallel) batch halves concurrently; harmless on
    # single-TC v5e/v6e.
    if B_pad >= 16 and B_pad % 16 == 0:
        n_bblk, B_blk = 2, B_pad // 2
    else:
        n_bblk, B_blk = 1, B_pad

    tt, per_step_bytes, fixed_bytes = _choose_tt(
        T, B_blk, H_pad, compute_dtype.itemsize, jnp.dtype(out_dtype).itemsize,
        tt_cap, vmem_budget_bytes)
    n_chunks = int(pl.cdiv(T, tt))
    T_pad = n_chunks * tt
    mask_start = tt - (T_pad - T)              # first step index that may be OOB
    vmem_limit = int(min(max(fixed_bytes + per_step_bytes * tt + (6 << 20),
                             32 << 20), 96 << 20))

    # --- weight prep: split the concat-Linear, transpose, pad, fuse ----------
    wzx, wzh = w_z[:, :I].T, w_z[:, I:].T          # (I, H), (H, H)
    wox, woh = w_o[:, :I].T, w_o[:, I:].T

    def pad2(w, rows, cols):
        return jnp.pad(w, ((0, rows - w.shape[0]), (0, cols - w.shape[1])))

    wxf = jnp.concatenate([pad2(wzx, I, H_pad), pad2(wox, I, H_pad)], axis=1)  # (I, 2Hp)
    bf = jnp.concatenate([jnp.pad(b_z, (0, H_pad - H)),
                          jnp.pad(b_o, (0, H_pad - H))])                       # (2Hp,)
    whf = jnp.concatenate([pad2(wzh, H_pad, H_pad),
                           pad2(woh, H_pad, H_pad)],
                          axis=1).astype(compute_dtype)                        # (Hp, 2Hp)

    # --- bulk x-projection: pad the (small) input, then one parallel matmul --
    # Folds the (B,T,I)->(T,B,.) relayout and the biases into the matmul; the
    # result goes straight to the compute dtype (bf16 by default), halving the
    # dominant HBM stream into the recurrent kernel.
    x_p = jnp.pad(x, ((0, B_pad - B), (0, T_pad - T), (0, 0)))
    prec = (lax.Precision.HIGHEST if compute_dtype == jnp.float32
            else lax.Precision.DEFAULT)
    xp = jnp.einsum("bti,ih->tbh", x_p, wxf, precision=prec,
                    preferred_element_type=jnp.float32) + bf
    xp = xp.astype(compute_dtype)                                  # (Tp, Bp, 2Hp)

    h0 = jnp.pad(hidden.astype(jnp.float32),
                 ((0, B_pad - B), (0, H_pad - H)))                 # (Bp, Hp)

    kernel = functools.partial(
        _mingru_recurrent_kernel, tt=tt, t_total=T, h_pad=H_pad,
        mask_start=mask_start,
        static_unroll=(tt <= static_unroll_limit), dyn_unroll=8)

    out, hfin = pl.pallas_call(
        kernel,
        out_shape=(jax.ShapeDtypeStruct((B_pad, T_pad, H_pad), out_dtype),
                   jax.ShapeDtypeStruct((B_pad, H_pad), jnp.float32)),
        grid_spec=pltpu.PrefetchScalarGridSpec(
            num_scalar_prefetch=0,
            grid=(n_bblk, n_chunks),
            in_specs=[
                # xp chunk: pipelined / double-buffered
                pl.BlockSpec((tt, B_blk, 2 * H_pad), lambda b, c: (c, b, 0)),
                # initial hidden state per batch block (tiny)
                pl.BlockSpec((B_blk, H_pad), lambda b, c: (b, 0)),
                # fused hidden weight: whole array resident in VMEM (1 copy,
                # no revolving double buffer)
                pl.BlockSpec(memory_space=pltpu.MemorySpace.VMEM),
            ],
            out_specs=[
                # outputs written batch-major -> no post-kernel transpose pass
                pl.BlockSpec((B_blk, tt, H_pad), lambda b, c: (b, c, 0)),
                pl.BlockSpec((B_blk, H_pad), lambda b, c: (b, 0)),
            ],
            scratch_shapes=[pltpu.VMEM((B_blk, H_pad), jnp.float32)],
        ),
        compiler_params=pltpu.CompilerParams(
            dimension_semantics=("parallel", "arbitrary"),
            vmem_limit_bytes=vmem_limit),
    )(xp, h0, whf)

    outputs = out[:B, :T, :H]                     # already (B, T, H)
    hidden_final = hfin[:B, :H].astype(x.dtype)
    return outputs, hidden_final


def init_params(key, input_size, hidden_size):
    """Xavier-uniform weights / zero biases (matches init_weights)."""
    k1, k2 = jax.random.split(key)
    fan_in = input_size + hidden_size
    fan_out = hidden_size
    limit = jnp.sqrt(6.0 / (fan_in + fan_out))
    w_z = jax.random.uniform(k1, (fan_out, fan_in), jnp.float32, -limit, limit)
    w_o = jax.random.uniform(k2, (fan_out, fan_in), jnp.float32, -limit, limit)
    b_z = jnp.zeros((fan_out,), jnp.float32)
    b_o = jnp.zeros((fan_out,), jnp.float32)
    return {"w_z": w_z, "b_z": b_z, "w_o": w_o, "b_o": b_o}


def _reference(x, params, hidden=None):
    """Pure-JAX reference matching the PyTorch loop (f32, HIGHEST precision)."""
    B, T, I = x.shape
    H = params["w_z"].shape[0]
    if hidden is None:
        hidden = jnp.zeros((B, H), dtype=x.dtype)
    hp = lax.Precision.HIGHEST
    outs = []
    for t in range(T):
        comb = jnp.concatenate([x[:, t, :], hidden], axis=1)
        z = jax.nn.sigmoid(jnp.dot(comb, params["w_z"].T, precision=hp)
                           + params["b_z"])
        h_tilde = jnp.tanh(jnp.dot(comb, params["w_o"].T, precision=hp)
                           + params["b_o"])
        hidden = (1.0 - z) * hidden + z * h_tilde
        outs.append(hidden)
    return jnp.stack(outs, axis=1), hidden


if __name__ == "__main__":
    key = jax.random.PRNGKey(0)
    k_x, k_p, k_x2, k_x3, k_h = jax.random.split(key, 5)

    batch, seq_len, input_size, hidden_size = 2, 8, 16, 32
    x = jax.random.normal(k_x, (batch, seq_len, input_size), dtype=jnp.float32)
    params = init_params(k_p, input_size, hidden_size)
    ref_out, ref_h = _reference(x, params)

    # 1) f32 compute path: tight parity with the PyTorch-style reference.
    out32, h32 = mingru_layer(x, params, compute_dtype=jnp.float32)
    jax.block_until_ready((out32, h32))
    assert out32.shape == (batch, seq_len, hidden_size)
    assert h32.shape == (batch, hidden_size)
    assert jnp.allclose(out32, ref_out, atol=5e-3, rtol=5e-3)
    assert jnp.allclose(h32, ref_h, atol=5e-3, rtol=5e-3)

    # 2) default bf16-MXU path (perf configuration) on the same input.
    outbf, hbf = mingru_layer(x, params)
    jax.block_until_ready((outbf, hbf))
    assert jnp.allclose(outbf, ref_out, atol=5e-2, rtol=5e-2)
    assert jnp.allclose(hbf, ref_h, atol=5e-2, rtol=5e-2)

    # 3) ragged T + batch padding + multiple time chunks (carried state, mask).
    b2, t2 = 3, 37
    x2 = jax.random.normal(k_x2, (b2, t2, input_size), dtype=jnp.float32)
    out2, h2 = mingru_layer(x2, params, tt_cap=16)        # 3 chunks of 16 steps
    jax.block_until_ready((out2, h2))
    ref_out2, ref_h2 = _reference(x2, params)
    assert out2.shape == (b2, t2, hidden_size)
    assert jnp.allclose(out2, ref_out2, atol=5e-2, rtol=5e-2)
    assert jnp.allclose(h2, ref_h2, atol=5e-2, rtol=5e-2)

    # 4) batch big enough to split into 2 "parallel" batch blocks (v7x 2-TC
    #    path) plus a non-zero initial hidden state.
    b3, t3 = 16, 20
    x3 = jax.random.normal(k_x3, (b3, t3, input_size), dtype=jnp.float32)
    h0 = 0.1 * jax.random.normal(k_h, (b3, hidden_size), dtype=jnp.float32)
    out3, h3 = mingru_layer(x3, params, h0)
    jax.block_until_ready((out3, h3))
    ref_out3, ref_h3 = _reference(x3, params, h0)
    assert jnp.allclose(out3, ref_out3, atol=5e-2, rtol=5e-2)
    assert jnp.allclose(h3, ref_h3, atol=5e-2, rtol=5e-2)

    print("KERNEL_OK")
</pallas_src>

<mosaic_0001>
module attributes {stable_mosaic.version = 11 : i64} {
  func.func @_mingru_recurrent_kernel(%arg0: i32, %arg1: i32, %arg2: memref<8x8x256xf32, #tpu.memory_space<vmem>>, %arg3: memref<8x128xf32, #tpu.memory_space<vmem>>, %arg4: memref<128x256xf32, #tpu.memory_space<vmem>>, %arg5: memref<8x8x128xf32, #tpu.memory_space<vmem>>, %arg6: memref<8x128xf32, #tpu.memory_space<vmem>>, %arg7: memref<8x128xf32, #tpu.memory_space<vmem>>) attributes {dimension_semantics = [#tpu.dimension_semantics<parallel>, #tpu.dimension_semantics<arbitrary>], iteration_bounds = array<i64: 1, 1>, scalar_prefetch = 0 : i64, scratch_operands = 1 : i64, tpu.core_type = #tpu.core_type<tc>, window_params = [{transform_indices = @transform_0, window_bounds = array<i64: 8, 8, 256>}, {transform_indices = @transform_1, window_bounds = array<i64: 8, 128>}, {pipeline_mode = #tpu.pipeline_mode<synchronous>, transform_indices = @transform_2, window_bounds = array<i64: 128, 256>}, {transform_indices = @transform_3, window_bounds = array<i64: 8, 8, 128>}, {transform_indices = @transform_4, window_bounds = array<i64: 8, 128>}]} {
    %c0_i32 = arith.constant 0 : i32
    %0 = arith.cmpi eq, %arg1, %c0_i32 : i32
    %1 = arith.extui %0 : i1 to i32
    %c0_i32_0 = arith.constant 0 : i32
    %2 = arith.cmpi ne, %1, %c0_i32_0 : i32
    scf.if %2 {
      %c0_64 = arith.constant 0 : index
      %c0_65 = arith.constant 0 : index
      %153 = vector.load %arg3[%c0_64, %c0_65] : memref<8x128xf32, #tpu.memory_space<vmem>>, vector<8x128xf32>
      %c0_66 = arith.constant 0 : index
      %c0_67 = arith.constant 0 : index
      %154 = vector.load %arg7[%c0_66, %c0_67] : memref<8x128xf32, #tpu.memory_space<vmem>>, vector<8x128xf32>
      tpu.vector_store %arg7[%c0_66, %c0_67], %153 {strides = array<i32>} : memref<8x128xf32, #tpu.memory_space<vmem>>, vector<8x128xf32>,
    } else {
    }
    %c0 = arith.constant 0 : index
    %c0_1 = arith.constant 0 : index
    %3 = vector.load %arg4[%c0, %c0_1] : memref<128x256xf32, #tpu.memory_space<vmem>>, vector<128x256xf32>
    %c0_2 = arith.constant 0 : index
    %c0_3 = arith.constant 0 : index
    %4 = vector.load %arg7[%c0_2, %c0_3] : memref<8x128xf32, #tpu.memory_space<vmem>>, vector<8x128xf32>
    %c0_4 = arith.constant 0 : index
    %c0_5 = arith.constant 0 : index
    %c0_6 = arith.constant 0 : index
    %5 = vector.load %arg2[%c0_4, %c0_5, %c0_6] : memref<8x8x256xf32, #tpu.memory_space<vmem>>, vector<1x8x256xf32>
    %6 = vector.shape_cast %5 : vector<1x8x256xf32> to vector<8x256xf32>
    %cst = arith.constant dense<0.000000e+00> : vector<8x256xf32>
    %7 = tpu.matmul %4, %3, %cst {dimension_numbers = #tpu.dot_dimension_numbers<[1], [0], [0], [1], [0, 0, 1, 1], [], []>} : vector<8x128xf32>, vector<128x256xf32>, vector<8x256xf32> -> vector<8x256xf32>
    %8 = arith.addf %6, %7 : vector<8x256xf32>
    %9 = vector.extract_strided_slice %8 {offsets = [0, 0], sizes = [8, 128], strides = [1, 1]} : vector<8x256xf32> to vector<8x128xf32>
    %10 = arith.negf %9 : vector<8x128xf32>
    %11 = math.exp %10 : vector<8x128xf32>
    %cst_7 = arith.constant 1.000000e+00 : f32
    %12 = vector.broadcast %cst_7 : f32 to vector<8x128xf32>
    %13 = arith.addf %12, %11 : vector<8x128xf32>
    %14 = arith.divf %12, %13 : vector<8x128xf32>
    %15 = vector.extract_strided_slice %8 {offsets = [0, 128], sizes = [8, 128], strides = [1, 1]} : vector<8x256xf32> to vector<8x128xf32>
    %16 = math.tanh %15 : vector<8x128xf32>
    %17 = arith.subf %16, %4 : vector<8x128xf32>
    %18 = arith.mulf %14, %17 : vector<8x128xf32>
    %19 = arith.addf %4, %18 : vector<8x128xf32>
    %c0_8 = arith.constant 0 : index
    %c0_9 = arith.constant 0 : index
    %c0_10 = arith.constant 0 : index
    %20 = vector.load %arg5[%c0_8, %c0_9, %c0_10] : memref<8x8x128xf32, #tpu.memory_space<vmem>>, vector<8x1x128xf32>
    %21 = vector.shape_cast %20 : vector<8x1x128xf32> to vector<8x128xf32>
    %22 = vector.shape_cast %19 : vector<8x128xf32> to vector<8x1x128xf32>
    tpu.vector_store %arg5[%c0_8, %c0_9, %c0_10], %22 {strides = array<i32>} : memref<8x8x128xf32, #tpu.memory_space<vmem>>, vector<8x1x128xf32>,
    %c1 = arith.constant 1 : index
    %c0_11 = arith.constant 0 : index
    %c0_12 = arith.constant 0 : index
    %23 = vector.load %arg2[%c1, %c0_11, %c0_12] : memref<8x8x256xf32, #tpu.memory_space<vmem>>, vector<1x8x256xf32>
    %24 = vector.shape_cast %23 : vector<1x8x256xf32> to vector<8x256xf32>
    %cst_13 = arith.constant dense<0.000000e+00> : vector<8x256xf32>
    %25 = tpu.matmul %19, %3, %cst_13 {dimension_numbers = #tpu.dot_dimension_numbers<[1], [0], [0], [1], [0, 0, 1, 1], [], []>} : vector<8x128xf32>, vector<128x256xf32>, vector<8x256xf32> -> vector<8x256xf32>
    %26 = arith.addf %24, %25 : vector<8x256xf32>
    %27 = vector.extract_strided_slice %26 {offsets = [0, 0], sizes = [8, 128], strides = [1, 1]} : vector<8x256xf32> to vector<8x128xf32>
    %28 = arith.negf %27 : vector<8x128xf32>
    %29 = math.exp %28 : vector<8x128xf32>
    %cst_14 = arith.constant 1.000000e+00 : f32
    %30 = vector.broadcast %cst_14 : f32 to vector<8x128xf32>
    %31 = arith.addf %30, %29 : vector<8x128xf32>
    %32 = arith.divf %30, %31 : vector<8x128xf32>
    %33 = vector.extract_strided_slice %26 {offsets = [0, 128], sizes = [8, 128], strides = [1, 1]} : vector<8x256xf32> to vector<8x128xf32>
    %34 = math.tanh %33 : vector<8x128xf32>
    %35 = arith.subf %34, %19 : vector<8x128xf32>
    %36 = arith.mulf %32, %35 : vector<8x128xf32>
    %37 = arith.addf %19, %36 : vector<8x128xf32>
    %c0_15 = arith.constant 0 : index
    %c1_16 = arith.constant 1 : index
    %c0_17 = arith.constant 0 : index
    %38 = vector.load %arg5[%c0_15, %c1_16, %c0_17] : memref<8x8x128xf32, #tpu.memory_space<vmem>>, vector<8x1x128xf32>
    %39 = vector.shape_cast %38 : vector<8x1x128xf32> to vector<8x128xf32>
    %40 = vector.shape_cast %37 : vector<8x128xf32> to vector<8x1x128xf32>
    tpu.vector_store %arg5[%c0_15, %c1_16, %c0_17], %40 {strides = array<i32>} : memref<8x8x128xf32, #tpu.memory_space<vmem>>, vector<8x1x128xf32>,
    %c2 = arith.constant 2 : index
    %c0_18 = arith.constant 0 : index
    %c0_19 = arith.constant 0 : index
    %41 = vector.load %arg2[%c2, %c0_18, %c0_19] : memref<8x8x256xf32, #tpu.memory_space<vmem>>, vector<1x8x256xf32>
    %42 = vector.shape_cast %41 : vector<1x8x256xf32> to vector<8x256xf32>
    %cst_20 = arith.constant dense<0.000000e+00> : vector<8x256xf32>
    %43 = tpu.matmul %37, %3, %cst_20 {dimension_numbers = #tpu.dot_dimension_numbers<[1], [0], [0], [1], [0, 0, 1, 1], [], []>} : vector<8x128xf32>, vector<128x256xf32>, vector<8x256xf32> -> vector<8x256xf32>
    %44 = arith.addf %42, %43 : vector<8x256xf32>
    %45 = vector.extract_strided_slice %44 {offsets = [0, 0], sizes = [8, 128], strides = [1, 1]} : vector<8x256xf32> to vector<8x128xf32>
    %46 = arith.negf %45 : vector<8x128xf32>
    %47 = math.exp %46 : vector<8x128xf32>
    %cst_21 = arith.constant 1.000000e+00 : f32
    %48 = vector.broadcast %cst_21 : f32 to vector<8x128xf32>
    %49 = arith.addf %48, %47 : vector<8x128xf32>
    %50 = arith.divf %48, %49 : vector<8x128xf32>
    %51 = vector.extract_strided_slice %44 {offsets = [0, 128], sizes = [8, 128], strides = [1, 1]} : vector<8x256xf32> to vector<8x128xf32>
    %52 = math.tanh %51 : vector<8x128xf32>
    %53 = arith.subf %52, %37 : vector<8x128xf32>
    %54 = arith.mulf %50, %53 : vector<8x128xf32>
    %55 = arith.addf %37, %54 : vector<8x128xf32>
    %c0_22 = arith.constant 0 : index
    %c2_23 = arith.constant 2 : index
    %c0_24 = arith.constant 0 : index
    %56 = vector.load %arg5[%c0_22, %c2_23, %c0_24] : memref<8x8x128xf32, #tpu.memory_space<vmem>>, vector<8x1x128xf32>
    %57 = vector.shape_cast %56 : vector<8x1x128xf32> to vector<8x128xf32>
    %58 = vector.shape_cast %55 : vector<8x128xf32> to vector<8x1x128xf32>
    tpu.vector_store %arg5[%c0_22, %c2_23, %c0_24], %58 {strides = array<i32>} : memref<8x8x128xf32, #tpu.memory_space<vmem>>, vector<8x1x128xf32>,
    %c3 = arith.constant 3 : index
    %c0_25 = arith.constant 0 : index
    %c0_26 = arith.constant 0 : index
    %59 = vector.load %arg2[%c3, %c0_25, %c0_26] : memref<8x8x256xf32, #tpu.memory_space<vmem>>, vector<1x8x256xf32>
    %60 = vector.shape_cast %59 : vector<1x8x256xf32> to vector<8x256xf32>
    %cst_27 = arith.constant dense<0.000000e+00> : vector<8x256xf32>
    %61 = tpu.matmul %55, %3, %cst_27 {dimension_numbers = #tpu.dot_dimension_numbers<[1], [0], [0], [1], [0, 0, 1, 1], [], []>} : vector<8x128xf32>, vector<128x256xf32>, vector<8x256xf32> -> vector<8x256xf32>
    %62 = arith.addf %60, %61 : vector<8x256xf32>
    %63 = vector.extract_strided_slice %62 {offsets = [0, 0], sizes = [8, 128], strides = [1, 1]} : vector<8x256xf32> to vector<8x128xf32>
    %64 = arith.negf %63 : vector<8x128xf32>
    %65 = math.exp %64 : vector<8x128xf32>
    %cst_28 = arith.constant 1.000000e+00 : f32
    %66 = vector.broadcast %cst_28 : f32 to vector<8x128xf32>
    %67 = arith.addf %66, %65 : vector<8x128xf32>
    %68 = arith.divf %66, %67 : vector<8x128xf32>
    %69 = vector.extract_strided_slice %62 {offsets = [0, 128], sizes = [8, 128], strides = [1, 1]} : vector<8x256xf32> to vector<8x128xf32>
    %70 = math.tanh %69 : vector<8x128xf32>
    %71 = arith.subf %70, %55 : vector<8x128xf32>
    %72 = arith.mulf %68, %71 : vector<8x128xf32>
    %73 = arith.addf %55, %72 : vector<8x128xf32>
    %c0_29 = arith.constant 0 : index
    %c3_30 = arith.constant 3 : index
    %c0_31 = arith.constant 0 : index
    %74 = vector.load %arg5[%c0_29, %c3_30, %c0_31] : memref<8x8x128xf32, #tpu.memory_space<vmem>>, vector<8x1x128xf32>
    %75 = vector.shape_cast %74 : vector<8x1x128xf32> to vector<8x128xf32>
    %76 = vector.shape_cast %73 : vector<8x128xf32> to vector<8x1x128xf32>
    tpu.vector_store %arg5[%c0_29, %c3_30, %c0_31], %76 {strides = array<i32>} : memref<8x8x128xf32, #tpu.memory_space<vmem>>, vector<8x1x128xf32>,
    %c4 = arith.constant 4 : index
    %c0_32 = arith.constant 0 : index
    %c0_33 = arith.constant 0 : index
    %77 = vector.load %arg2[%c4, %c0_32, %c0_33] : memref<8x8x256xf32, #tpu.memory_space<vmem>>, vector<1x8x256xf32>
    %78 = vector.shape_cast %77 : vector<1x8x256xf32> to vector<8x256xf32>
    %cst_34 = arith.constant dense<0.000000e+00> : vector<8x256xf32>
    %79 = tpu.matmul %73, %3, %cst_34 {dimension_numbers = #tpu.dot_dimension_numbers<[1], [0], [0], [1], [0, 0, 1, 1], [], []>} : vector<8x128xf32>, vector<128x256xf32>, vector<8x256xf32> -> vector<8x256xf32>
    %80 = arith.addf %78, %79 : vector<8x256xf32>
    %81 = vector.extract_strided_slice %80 {offsets = [0, 0], sizes = [8, 128], strides = [1, 1]} : vector<8x256xf32> to vector<8x128xf32>
    %82 = arith.negf %81 : vector<8x128xf32>
    %83 = math.exp %82 : vector<8x128xf32>
    %cst_35 = arith.constant 1.000000e+00 : f32
    %84 = vector.broadcast %cst_35 : f32 to vector<8x128xf32>
    %85 = arith.addf %84, %83 : vector<8x128xf32>
    %86 = arith.divf %84, %85 : vector<8x128xf32>
    %87 = vector.extract_strided_slice %80 {offsets = [0, 128], sizes = [8, 128], strides = [1, 1]} : vector<8x256xf32> to vector<8x128xf32>
    %88 = math.tanh %87 : vector<8x128xf32>
    %89 = arith.subf %88, %73 : vector<8x128xf32>
    %90 = arith.mulf %86, %89 : vector<8x128xf32>
    %91 = arith.addf %73, %90 : vector<8x128xf32>
    %c0_36 = arith.constant 0 : index
    %c4_37 = arith.constant 4 : index
    %c0_38 = arith.constant 0 : index
    %92 = vector.load %arg5[%c0_36, %c4_37, %c0_38] : memref<8x8x128xf32, #tpu.memory_space<vmem>>, vector<8x1x128xf32>
    %93 = vector.shape_cast %92 : vector<8x1x128xf32> to vector<8x128xf32>
    %94 = vector.shape_cast %91 : vector<8x128xf32> to vector<8x1x128xf32>
    tpu.vector_store %arg5[%c0_36, %c4_37, %c0_38], %94 {strides = array<i32>} : memref<8x8x128xf32, #tpu.memory_space<vmem>>, vector<8x1x128xf32>,
    %c5 = arith.constant 5 : index
    %c0_39 = arith.constant 0 : index
    %c0_40 = arith.constant 0 : index
    %95 = vector.load %arg2[%c5, %c0_39, %c0_40] : memref<8x8x256xf32, #tpu.memory_space<vmem>>, vector<1x8x256xf32>
    %96 = vector.shape_cast %95 : vector<1x8x256xf32> to vector<8x256xf32>
    %cst_41 = arith.constant dense<0.000000e+00> : vector<8x256xf32>
    %97 = tpu.matmul %91, %3, %cst_41 {dimension_numbers = #tpu.dot_dimension_numbers<[1], [0], [0], [1], [0, 0, 1, 1], [], []>} : vector<8x128xf32>, vector<128x256xf32>, vector<8x256xf32> -> vector<8x256xf32>
    %98 = arith.addf %96, %97 : vector<8x256xf32>
    %99 = vector.extract_strided_slice %98 {offsets = [0, 0], sizes = [8, 128], strides = [1, 1]} : vector<8x256xf32> to vector<8x128xf32>
    %100 = arith.negf %99 : vector<8x128xf32>
    %101 = math.exp %100 : vector<8x128xf32>
    %cst_42 = arith.constant 1.000000e+00 : f32
    %102 = vector.broadcast %cst_42 : f32 to vector<8x128xf32>
    %103 = arith.addf %102, %101 : vector<8x128xf32>
    %104 = arith.divf %102, %103 : vector<8x128xf32>
    %105 = vector.extract_strided_slice %98 {offsets = [0, 128], sizes = [8, 128], strides = [1, 1]} : vector<8x256xf32> to vector<8x128xf32>
    %106 = math.tanh %105 : vector<8x128xf32>
    %107 = arith.subf %106, %91 : vector<8x128xf32>
    %108 = arith.mulf %104, %107 : vector<8x128xf32>
    %109 = arith.addf %91, %108 : vector<8x128xf32>
    %c0_43 = arith.constant 0 : index
    %c5_44 = arith.constant 5 : index
    %c0_45 = arith.constant 0 : index
    %110 = vector.load %arg5[%c0_43, %c5_44, %c0_45] : memref<8x8x128xf32, #tpu.memory_space<vmem>>, vector<8x1x128xf32>
    %111 = vector.shape_cast %110 : vector<8x1x128xf32> to vector<8x128xf32>
    %112 = vector.shape_cast %109 : vector<8x128xf32> to vector<8x1x128xf32>
    tpu.vector_store %arg5[%c0_43, %c5_44, %c0_45], %112 {strides = array<i32>} : memref<8x8x128xf32, #tpu.memory_space<vmem>>, vector<8x1x128xf32>,
    %c6 = arith.constant 6 : index
    %c0_46 = arith.constant 0 : index
    %c0_47 = arith.constant 0 : index
    %113 = vector.load %arg2[%c6, %c0_46, %c0_47] : memref<8x8x256xf32, #tpu.memory_space<vmem>>, vector<1x8x256xf32>
    %114 = vector.shape_cast %113 : vector<1x8x256xf32> to vector<8x256xf32>
    %cst_48 = arith.constant dense<0.000000e+00> : vector<8x256xf32>
    %115 = tpu.matmul %109, %3, %cst_48 {dimension_numbers = #tpu.dot_dimension_numbers<[1], [0], [0], [1], [0, 0, 1, 1], [], []>} : vector<8x128xf32>, vector<128x256xf32>, vector<8x256xf32> -> vector<8x256xf32>
    %116 = arith.addf %114, %115 : vector<8x256xf32>
    %117 = vector.extract_strided_slice %116 {offsets = [0, 0], sizes = [8, 128], strides = [1, 1]} : vector<8x256xf32> to vector<8x128xf32>
    %118 = arith.negf %117 : vector<8x128xf32>
    %119 = math.exp %118 : vector<8x128xf32>
    %cst_49 = arith.constant 1.000000e+00 : f32
    %120 = vector.broadcast %cst_49 : f32 to vector<8x128xf32>
    %121 = arith.addf %120, %119 : vector<8x128xf32>
    %122 = arith.divf %120, %121 : vector<8x128xf32>
    %123 = vector.extract_strided_slice %116 {offsets = [0, 128], sizes = [8, 128], strides = [1, 1]} : vector<8x256xf32> to vector<8x128xf32>
    %124 = math.tanh %123 : vector<8x128xf32>
    %125 = arith.subf %124, %109 : vector<8x128xf32>
    %126 = arith.mulf %122, %125 : vector<8x128xf32>
    %127 = arith.addf %109, %126 : vector<8x128xf32>
    %c0_50 = arith.constant 0 : index
    %c6_51 = arith.constant 6 : index
    %c0_52 = arith.constant 0 : index
    %128 = vector.load %arg5[%c0_50, %c6_51, %c0_52] : memref<8x8x128xf32, #tpu.memory_space<vmem>>, vector<8x1x128xf32>
    %129 = vector.shape_cast %128 : vector<8x1x128xf32> to vector<8x128xf32>
    %130 = vector.shape_cast %127 : vector<8x128xf32> to vector<8x1x128xf32>
    tpu.vector_store %arg5[%c0_50, %c6_51, %c0_52], %130 {strides = array<i32>} : memref<8x8x128xf32, #tpu.memory_space<vmem>>, vector<8x1x128xf32>,
    %c7 = arith.constant 7 : index
    %c0_53 = arith.constant 0 : index
    %c0_54 = arith.constant 0 : index
    %131 = vector.load %arg2[%c7, %c0_53, %c0_54] : memref<8x8x256xf32, #tpu.memory_space<vmem>>, vector<1x8x256xf32>
    %132 = vector.shape_cast %131 : vector<1x8x256xf32> to vector<8x256xf32>
    %cst_55 = arith.constant dense<0.000000e+00> : vector<8x256xf32>
    %133 = tpu.matmul %127, %3, %cst_55 {dimension_numbers = #tpu.dot_dimension_numbers<[1], [0], [0], [1], [0, 0, 1, 1], [], []>} : vector<8x128xf32>, vector<128x256xf32>, vector<8x256xf32> -> vector<8x256xf32>
    %134 = arith.addf %132, %133 : vector<8x256xf32>
    %135 = vector.extract_strided_slice %134 {offsets = [0, 0], sizes = [8, 128], strides = [1, 1]} : vector<8x256xf32> to vector<8x128xf32>
    %136 = arith.negf %135 : vector<8x128xf32>
    %137 = math.exp %136 : vector<8x128xf32>
    %cst_56 = arith.constant 1.000000e+00 : f32
    %138 = vector.broadcast %cst_56 : f32 to vector<8x128xf32>
    %139 = arith.addf %138, %137 : vector<8x128xf32>
    %140 = arith.divf %138, %139 : vector<8x128xf32>
    %141 = vector.extract_strided_slice %134 {offsets = [0, 128], sizes = [8, 128], strides = [1, 1]} : vector<8x256xf32> to vector<8x128xf32>
    %142 = math.tanh %141 : vector<8x128xf32>
    %143 = arith.subf %142, %127 : vector<8x128xf32>
    %144 = arith.mulf %140, %143 : vector<8x128xf32>
    %145 = arith.addf %127, %144 : vector<8x128xf32>
    %c0_57 = arith.constant 0 : index
    %c7_58 = arith.constant 7 : index
    %c0_59 = arith.constant 0 : index
    %146 = vector.load %arg5[%c0_57, %c7_58, %c0_59] : memref<8x8x128xf32, #tpu.memory_space<vmem>>, vector<8x1x128xf32>
    %147 = vector.shape_cast %146 : vector<8x1x128xf32> to vector<8x128xf32>
    %148 = vector.shape_cast %145 : vector<8x128xf32> to vector<8x1x128xf32>
    tpu.vector_store %arg5[%c0_57, %c7_58, %c0_59], %148 {strides = array<i32>} : memref<8x8x128xf32, #tpu.memory_space<vmem>>, vector<8x1x128xf32>,
    %c0_60 = arith.constant 0 : index
    %c0_61 = arith.constant 0 : index
    %149 = vector.load %arg7[%c0_60, %c0_61] : memref<8x128xf32, #tpu.memory_space<vmem>>, vector<8x128xf32>
    tpu.vector_store %arg7[%c0_60, %c0_61], %145 {strides = array<i32>} : memref<8x128xf32, #tpu.memory_space<vmem>>, vector<8x128xf32>,
    %c0_i32_62 = arith.constant 0 : i32
    %150 = arith.cmpi eq, %arg1, %c0_i32_62 : i32
    %151 = arith.extui %150 : i1 to i32
    %c0_i32_63 = arith.constant 0 : i32
    %152 = arith.cmpi ne, %151, %c0_i32_63 : i32
    scf.if %152 {
      %c0_64 = arith.constant 0 : index
      %c0_65 = arith.constant 0 : index
      %153 = vector.load %arg6[%c0_64, %c0_65] : memref<8x128xf32, #tpu.memory_space<vmem>>, vector<8x128xf32>
      tpu.vector_store %arg6[%c0_64, %c0_65], %145 {strides = array<i32>} : memref<8x128xf32, #tpu.memory_space<vmem>>, vector<8x128xf32>,
    } else {
    }
    return
  }
  func.func @transform_0(%arg0: i32, %arg1: i32) -> (i32, i32, i32) {
    %c0_i32 = arith.constant 0 : i32
    %c0_i32_0 = arith.constant 0 : i32
    return %arg1, %arg0, %c0_i32 : i32, i32, i32
  }
  func.func @transform_1(%arg0: i32, %arg1: i32) -> (i32, i32) {
    %c0_i32 = arith.constant 0 : i32
    %c0_i32_0 = arith.constant 0 : i32
    return %arg0, %c0_i32 : i32, i32
  }
  func.func @transform_2(%arg0: i32, %arg1: i32) -> (i32, i32) {
    %c0_i32 = arith.constant 0 : i32
    %c0_i32_0 = arith.constant 0 : i32
    %c0_i32_1 = arith.constant 0 : i32
    return %c0_i32, %c0_i32_0 : i32, i32
  }
  func.func @transform_3(%arg0: i32, %arg1: i32) -> (i32, i32, i32) {
    %c0_i32 = arith.constant 0 : i32
    %c0_i32_0 = arith.constant 0 : i32
    return %arg0, %arg1, %c0_i32 : i32, i32, i32
  }
  func.func @transform_4(%arg0: i32, %arg1: i32) -> (i32, i32) {
    %c0_i32 = arith.constant 0 : i32
    %c0_i32_0 = arith.constant 0 : i32
    return %arg0, %c0_i32 : i32, i32
  }
}

</mosaic_0001>

<bundles_post_ra>
// kernel: mingru_layer.1
= control target key start
LH: loop header
LB: loop body
LE: loop exit
PB: predicated region body
PF: predicated region fallthrough
CT: control target
= control target key end

     0   :  { %v1643_v3 = vmov 0.0   ;;  %v1644_v59 = vmov 1966171168   ;;  %v145_v61 = vlaneseq  ;;  %s2230_s2 = inlined_call_operand.vmem [shape: f32[128,256], index: 2, kind: input, shape index: {}]   ;;  %s2231_s1 = inlined_call_operand.vmem [shape: f32[8,128], index: 1, kind: input, shape index: {}]   ;;  %s2232_s0 = inlined_call_operand.vmem [shape: f32[8,8,256], index: 0, kind: input, shape index: {}]   ;;  %s2233_s3 = inlined_call_operand.vmem [shape: f32[8,8,128], index: 3, kind: output, shape index: {0}]   ;;  %s2234_s4 = inlined_call_operand.vmem [shape: f32[8,128], index: 4, kind: output, shape index: {1}]  }
   0x1   :  { %v23_v0 = vld [vmem:[%s2230_s2 + $0x8] sm:$0xff]  ;;  %v25_v1 = vld [vmem:[%s2230_s2 + $0x18] sm:$0xff]  ;;  %v22_v2 = vld [vmem:[%s2230_s2] sm:$0xff]  ;;  %121 = vmatprep.mubr.f32.mxu0 %v1643_v3  ;;  %273 = vmatprep.mubr.f32.mxu1 %v1643_v3  ;;  %v143_v60 = vunpack.c.l.s4 %v1644_v59 }
   0x2   :  { %v1681_v4 = vpack.c.bf16 %v25_v1, %v23_v0  ;;  %v24_v5 = vld [vmem:[%s2230_s2 + $0x10] sm:$0xff]  ;;  %v27_v6 = vld [vmem:[%s2230_s2 + $0x28] sm:$0xff]  ;;  %v29_v7 = vld [vmem:[%s2230_s2 + $0x38] sm:$0xff]  ;;  %v146_v0 = vshrl.u32 %v145_v61, 7 }
   0x3   :  { %v1692_v8 = vpack.c.bf16 %v24_v5, %v22_v2  ;;  %v1694_v9 = vpack.c.bf16 %v29_v7, %v27_v6  ;;  %v26_v10 = vld [vmem:[%s2230_s2 + $0x20] sm:$0xff]  ;;  %v28_v11 = vld [vmem:[%s2230_s2 + $0x30] sm:$0xff]  ;;  %v31_v12 = vld [vmem:[%s2230_s2 + $0x48] sm:$0xff]  ;;  %v144_v63 = vunpack.c.0.s8 %v143_v60 }
   0x4   :  { %1338 = vmatprep.subr.bf16.mxu0 %v1681_v4  ;;  %v33_v13 = vld [vmem:[%s2230_s2 + $0x58] sm:$0xff]  ;;  %1370 = vmatprep.subr.bf16.mxu1 %v1681_v4  ;;  %v1711_v14 = vpack.c.bf16 %v28_v11, %v26_v10  ;;  %v30_v16 = vld [vmem:[%s2230_s2 + $0x40] sm:$0xff]  ;;  %v32_v17 = vld [vmem:[%s2230_s2 + $0x50] sm:$0xff] }
   0x5   :  { %1340 = vmatpush1.bf16.msra.mxu0 %v1692_v8  ;;  %1372 = vmatpush1.bf16.msra.mxu1 %v1692_v8  ;;  %v1715_v15 = vpack.c.bf16 %v33_v13, %v31_v12  ;;  %v35_v18 = vld [vmem:[%s2230_s2 + $0x68] sm:$0xff]  ;;  %v37_v19 = vld [vmem:[%s2230_s2 + $0x78] sm:$0xff]  ;;  %v1731_v20 = vpack.c.bf16 %v32_v17, %v30_v16  ;;  %v34_v22 = vld [vmem:[%s2230_s2 + $0x60] sm:$0xff]  ;;  %v1860_v6 = vsub.s32 %v144_v63, %v146_v0 }
   0x6   :  { %1342 = vmatprep.subr.bf16.mxu0 %v1694_v9  ;;  %1374 = vmatprep.subr.bf16.mxu1 %v1694_v9  ;;  %v1735_v21 = vpack.c.bf16 %v37_v19, %v35_v18  ;;  %v36_v23 = vld [vmem:[%s2230_s2 + $0x70] sm:$0xff]  ;;  %v39_v24 = vld [vmem:[%s2230_s2 + $0x88] sm:$0xff]  ;;  %v41_v25 = vld [vmem:[%s2230_s2 + $0x98] sm:$0xff] }
   0x7   :  { %v1751_v26 = vpack.c.bf16 %v36_v23, %v34_v22  ;;  %v1755_v27 = vpack.c.bf16 %v41_v25, %v39_v24  ;;  %v38_v28 = vld [vmem:[%s2230_s2 + $0x80] sm:$0xff]  ;;  %v40_v29 = vld [vmem:[%s2230_s2 + $0x90] sm:$0xff]  ;;  %v43_v30 = vld [vmem:[%s2230_s2 + $0xa8] sm:$0xff] }
   0x8   :  { %v45_v31 = vld [vmem:[%s2230_s2 + $0xb8] sm:$0xff]  ;;  %v1771_v32 = vpack.c.bf16 %v40_v29, %v38_v28  ;;  %v42_v34 = vld [vmem:[%s2230_s2 + $0xa0] sm:$0xff]  ;;  %v44_v35 = vld [vmem:[%s2230_s2 + $0xb0] sm:$0xff] }
   0x9   :  { %1344 = vmatpush1.bf16.msra.mxu0 %v1711_v14  ;;  %1376 = vmatpush1.bf16.msra.mxu1 %v1711_v14  ;;  %v1775_v33 = vpack.c.bf16 %v45_v31, %v43_v30  ;;  %v47_v36 = vld [vmem:[%s2230_s2 + $0xc8] sm:$0xff]  ;;  %v49_v37 = vld [vmem:[%s2230_s2 + $0xd8] sm:$0xff]  ;;  %v1791_v38 = vpack.c.bf16 %v44_v35, %v42_v34  ;;  %v46_v40 = vld [vmem:[%s2230_s2 + $0xc0] sm:$0xff] }
   0xa   :  { %1346 = vmatprep.subr.bf16.mxu0 %v1715_v15  ;;  %1378 = vmatprep.subr.bf16.mxu1 %v1715_v15  ;;  %v1795_v39 = vpack.c.bf16 %v49_v37, %v47_v36  ;;  %v48_v41 = vld [vmem:[%s2230_s2 + $0xd0] sm:$0xff]  ;;  %v51_v42 = vld [vmem:[%s2230_s2 + $0xe8] sm:$0xff]  ;;  %v53_v43 = vld [vmem:[%s2230_s2 + $0xf8] sm:$0xff] }
   0xb   :  { %v1811_v44 = vpack.c.bf16 %v48_v41, %v46_v40  ;;  %v1815_v45 = vpack.c.bf16 %v53_v43, %v51_v42  ;;  %v50_v46 = vld [vmem:[%s2230_s2 + $0xe0] sm:$0xff]  ;;  %v52_v47 = vld [vmem:[%s2230_s2 + $0xf0] sm:$0xff]  ;;  %v56_v55 = vld [vmem:[%s2232_s0 + $0x8] sm:$0xff] }
   0xc   :  { %v1825_v48 = vpack.c.bf16 %v52_v47, %v50_v46  ;;  %v20_v49 = vld [vmem:[%s2231_s1] sm:$0xff]  ;;  %v1288_v29 = vld [vmem:[%s2232_s0 + $0x10] sm:$0xff]  ;;  %v1289_v36 = vld [vmem:[%s2232_s0 + $0x18] sm:$0xff] }
   0xd   :  { %1348 = vmatpush1.bf16.msra.mxu0 %v1731_v20  ;;  %1380 = vmatpush1.bf16.msra.mxu1 %v1731_v20  ;;  %v55_v50 = vld [vmem:[%s2232_s0] sm:$0xff] }
   0xe   :  { %1350 = vmatprep.subr.bf16.mxu0 %v1735_v21  ;;  %1382 = vmatprep.subr.bf16.mxu1 %v1735_v21  ;;  %v1295_v63 = vld [vmem:[%s2232_s0 + $0x20] sm:$0xff] }
  0x11   :  { %1352 = vmatpush1.bf16.msra.mxu0 %v1751_v26  ;;  %1384 = vmatpush1.bf16.msra.mxu1 %v1751_v26 }
  0x12   :  { %1354 = vmatprep.subr.bf16.mxu0 %v1755_v27  ;;  %1386 = vmatprep.subr.bf16.mxu1 %v1755_v27 }
  0x15   :  { %1356 = vmatpush1.bf16.msra.mxu0 %v1771_v32  ;;  %1388 = vmatpush1.bf16.msra.mxu1 %v1771_v32 }
  0x16   :  { %1358 = vmatprep.subr.bf16.mxu0 %v1775_v33  ;;  %1390 = vmatprep.subr.bf16.mxu1 %v1775_v33 }
  0x19   :  { %1360 = vmatpush1.bf16.msra.mxu0 %v1791_v38  ;;  %1392 = vmatpush1.bf16.msra.mxu1 %v1791_v38 }
  0x1a   :  { %1362 = vmatprep.subr.bf16.mxu0 %v1795_v39  ;;  %1394 = vmatprep.subr.bf16.mxu1 %v1795_v39 }
  0x1d   :  { %1364 = vmatpush1.bf16.msra.mxu0 %v1811_v44  ;;  %1396 = vmatpush1.bf16.msra.mxu1 %v1811_v44 }
  0x1e   :  { %1366 = vmatprep.subr.bf16.mxu0 %v1815_v45  ;;  %1398 = vmatprep.subr.bf16.mxu1 %v1815_v45 }
  0x21   :  { %1368 = vmatpush1.bf16.msra.mxu0 %v1825_v48  ;;  %1400 = vmatpush1.bf16.msra.mxu1 %v1825_v48 }
  0x22   :  { %1402 = vmatprep.subr.bf16.mxu0 %v1681_v4  ;;  %1434 = vmatprep.subr.bf16.mxu1 %v1681_v4 }
  0x24   :  { %122 = vmatmul.mubr.f32.vlgmr.msra.gmra.mrb[0].mxu0 %v20_v49 }
  0x25   :  { %1404 = vmatpush1.bf16.msra.mxu0 %v1692_v8  ;;  %425 = vmatprep.mubr.f32.mxu0 %v1643_v3 }
  0x26   :  { %1406 = vmatprep.subr.bf16.mxu0 %v1694_v9 }
  0x29   :  { %1408 = vmatpush1.bf16.msra.mxu0 %v1711_v14 }
  0x2a   :  { %1410 = vmatprep.subr.bf16.mxu0 %v1715_v15 }
  0x2d   :  { %1412 = vmatpush1.bf16.msra.mxu0 %v1731_v20 }
  0x2e   :  { %1414 = vmatprep.subr.bf16.mxu0 %v1735_v21 }
  0x31   :  { %1416 = vmatpush1.bf16.msra.mxu0 %v1751_v26 }
  0x32   :  { %1418 = vmatprep.subr.bf16.mxu0 %v1755_v27 }
  0x35   :  { %1420 = vmatpush1.bf16.msra.mxu0 %v1771_v32 }
  0x36   :  { %1422 = vmatprep.subr.bf16.mxu0 %v1775_v33 }
  0x39   :  { %1424 = vmatpush1.bf16.msra.mxu0 %v1791_v38 }
  0x3a   :  { %1426 = vmatprep.subr.bf16.mxu0 %v1795_v39 }
  0x3d   :  { %1428 = vmatpush1.bf16.msra.mxu0 %v1811_v44 }
  0x3e   :  { %1430 = vmatprep.subr.bf16.mxu0 %v1815_v45 }
  0x41   :  { %1432 = vmatpush1.bf16.msra.mxu0 %v1825_v48 }
  0x42   :  { %1466 = vmatprep.subr.bf16.mxu0 %v1681_v4 }
  0xf7   :  { %v123_v51 = vpop.f32.mrb[0].mxu0 }
  0xf8   :  { %v128_v52 = vadd.f32 %v123_v51, %v55_v50  ;;  %v125_v53 = vpop.f32.mrb[1].mxu0 }
  0xf9   :  { %v129_v56 = vadd.f32 %v125_v53, %v56_v55 }
  0xfa   :  { %v1283_v54 = vmul.f32 -1.442695, %v128_v52 }
  0xfc   :  { %1595 = vpow2.f32 %v1283_v54 }
  0xfd   :  { %1597 = vtanh.f32 %v129_v56 }
 0x106   :  { %v1596_v57 = vpop.eup %1595 }
 0x107   :  { %v133_v58 = vadd.f32 1.0, %v1596_v57  ;;  %v1598_v62 = vpop.eup %1597 }
 0x108   :  { %v137_v1 = vsub.f32 %v1598_v62, %v20_v49 }
 0x109   :  { %1599 = vrcp.f32 %v133_v58 }
 0x113   :  { %v1600_v2 = vpop.eup %1599 }
 0x114   :  { %v138_v5 = vmul.f32 %v1600_v2, %v137_v1 }
 0x116   :  { %v139_v7 = vadd.f32 %v138_v5, %v20_v49 }
 0x118   :  { %v141_v10 = vcombine.high %v139_v7, %v139_v7  ;;  %v148_v11 = vrot.slane %v139_v7, %v1860_v6  ;;  %274 = vmatmul.mubr.f32.vlgmr.msra.gmra.mrb[0].mxu1 %v139_v7 }
 0x119   :  { %1436 = vmatpush1.bf16.msra.mxu1 %v1692_v8  ;;  %577 = vmatprep.mubr.f32.mxu1 %v1643_v3 }
 0x11a   :  { %v155_v12 = vrot.slane %v141_v10, %v1860_v6  ;;  %v156_v13 = vcombine.high %v148_v11, %v148_v11  ;;  %v164_v16 = vrot.slane %v148_v11, %v1860_v6  ;;  %1284 = vst.sshfl [vmem:[%s2233_s3] sm:$0x1 pattern:$0x73625140] %v148_v11  ;;  %1438 = vmatprep.subr.bf16.mxu1 %v1694_v9 }
 0x11c   :  { %v157_v17 = vcombine.high %v155_v12, %v155_v12  ;;  %v171_v18 = vrot.slane %v155_v12, %v1860_v6  ;;  %v178_v19 = vrot.slane %v156_v13, %v1860_v6  ;;  %v186_v22 = vcombine.high %v164_v16, %v164_v16  ;;  %1285 = vst.sshfl [vmem:[%s2233_s3 + $0x8] sm:$0x1 pattern:$0x73625140] %v156_v13 }
 0x11d   :  { %1286 = vst.sshfl [vmem:[%s2233_s3 + $0x20] sm:$0x1 pattern:$0x73625140] %v155_v12  ;;  %1440 = vmatpush1.bf16.msra.mxu1 %v1711_v14 }
 0x11e   :  { %v185_v23 = vrot.slane %v157_v17, %v1860_v6  ;;  %v187_v24 = vcombine.high %v171_v18, %v171_v18  ;;  %v188_v25 = vcombine.high %v178_v19, %v178_v19  ;;  %200 = vst [vmem:[%s2233_s3 + $0x10] sm:$0x1] %v186_v22  ;;  %1287 = vst.sshfl [vmem:[%s2233_s3 + $0x28] sm:$0x1 pattern:$0x73625140] %v157_v17  ;;  %1442 = vmatprep.subr.bf16.mxu1 %v1715_v15 }
 0x120   :  { %v189_v28 = vcombine.high %v185_v23, %v185_v23  ;;  %201 = vst [vmem:[%s2233_s3 + $0x18] sm:$0x1] %v188_v25  ;;  %204 = vst [vmem:[%s2233_s3 + $0x30] sm:$0x1] %v187_v24 }
 0x121   :  { %1444 = vmatpush1.bf16.msra.mxu1 %v1731_v20 }
 0x122   :  { %205 = vst [vmem:[%s2233_s3 + $0x38] sm:$0x1] %v189_v28  ;;  %1446 = vmatprep.subr.bf16.mxu1 %v1735_v21 }
 0x125   :  { %1448 = vmatpush1.bf16.msra.mxu1 %v1751_v26 }
 0x126   :  { %1450 = vmatprep.subr.bf16.mxu1 %v1755_v27 }
 0x129   :  { %1452 = vmatpush1.bf16.msra.mxu1 %v1771_v32 }
 0x12a   :  { %1454 = vmatprep.subr.bf16.mxu1 %v1775_v33 }
 0x12d   :  { %1456 = vmatpush1.bf16.msra.mxu1 %v1791_v38 }
 0x12e   :  { %1458 = vmatprep.subr.bf16.mxu1 %v1795_v39 }
 0x131   :  { %1460 = vmatpush1.bf16.msra.mxu1 %v1811_v44 }
 0x132   :  { %1462 = vmatprep.subr.bf16.mxu1 %v1815_v45 }
 0x135   :  { %1464 = vmatpush1.bf16.msra.mxu1 %v1825_v48 }
 0x136   :  { %1498 = vmatprep.subr.bf16.mxu1 %v1681_v4 }
 0x1eb   :  { %v275_v30 = vpop.f32.mrb[0].mxu1 }
 0x1ec   :  { %v280_v31 = vadd.f32 %v1288_v29, %v275_v30  ;;  %v277_v34 = vpop.f32.mrb[1].mxu1 }
 0x1ed   :  { %v281_v37 = vadd.f32 %v1289_v36, %v277_v34 }
 0x1ee   :  { %v1290_v35 = vmul.f32 -1.442695, %v280_v31 }
 0x1f0   :  { %1601 = vpow2.f32 %v1290_v35 }
 0x1f1   :  { %1603 = vtanh.f32 %v281_v37 }
 0x1fa   :  { %v1602_v40 = vpop.eup %1601 }
 0x1fb   :  { %v285_v41 = vadd.f32 1.0, %v1602_v40  ;;  %v1604_v42 = vpop.eup %1603 }
 0x1fc   :  { %v289_v43 = vsub.f32 %v1604_v42, %v139_v7 }
 0x1fd   :  { %1605 = vrcp.f32 %v285_v41  ;;  %v1302_v41 = vld [vmem:[%s2232_s0 + $0x30] sm:$0xff] }
 0x207   :  { %v1606_v46 = vpop.eup %1605 }
 0x208   :  { %v290_v47 = vmul.f32 %v1606_v46, %v289_v43 }
 0x20a   :  { %v291_v49 = vadd.f32 %v290_v47, %v139_v7  ;;  %v1296_v7 = vld [vmem:[%s2232_s0 + $0x28] sm:$0xff] }
 0x20c   :  { %v293_v50 = vcombine.high %v291_v49, %v291_v49  ;;  %v300_v51 = vrot.slane %v291_v49, %v1860_v6  ;;  %426 = vmatmul.mubr.f32.vlgmr.msra.gmra.mrb[2].mxu0 %v291_v49 }
 0x20d   :  { %1468 = vmatpush1.bf16.msra.mxu0 %v1692_v8  ;;  %729 = vmatprep.mubr.f32.mxu0 %v1643_v3 }
 0x20e   :  { %v307_v52 = vrot.slane %v293_v50, %v1860_v6  ;;  %v308_v53 = vcombine.high %v300_v51, %v300_v51  ;;  %v316_v54 = vrot.slane %v300_v51, %v1860_v6  ;;  %1291 = vst.sshfl [vmem:[%s2233_s3 + $0x1] sm:$0x1 pattern:$0x73625140] %v300_v51  ;;  %1470 = vmatprep.subr.bf16.mxu0 %v1694_v9 }
 0x210   :  { %v309_v55 = vcombine.high %v307_v52, %v307_v52  ;;  %v323_v56 = vrot.slane %v307_v52, %v1860_v6  ;;  %v330_v57 = vrot.slane %v308_v53, %v1860_v6  ;;  %v338_v58 = vcombine.high %v316_v54, %v316_v54  ;;  %1292 = vst.sshfl [vmem:[%s2233_s3 + $0x9] sm:$0x1 pattern:$0x73625140] %v308_v53 }
 0x211   :  { %1293 = vst.sshfl [vmem:[%s2233_s3 + $0x21] sm:$0x1 pattern:$0x73625140] %v307_v52  ;;  %1472 = vmatpush1.bf16.msra.mxu0 %v1711_v14 }
 0x212   :  { %v337_v59 = vrot.slane %v309_v55, %v1860_v6  ;;  %v339_v60 = vcombine.high %v323_v56, %v323_v56  ;;  %v340_v61 = vcombine.high %v330_v57, %v330_v57  ;;  %352 = vst [vmem:[%s2233_s3 + $0x11] sm:$0x1] %v338_v58  ;;  %1294 = vst.sshfl [vmem:[%s2233_s3 + $0x29] sm:$0x1 pattern:$0x73625140] %v309_v55  ;;  %1474 = vmatprep.subr.bf16.mxu0 %v1715_v15 }
 0x214   :  { %v341_v62 = vcombine.high %v337_v59, %v337_v59  ;;  %353 = vst [vmem:[%s2233_s3 + $0x19] sm:$0x1] %v340_v61  ;;  %356 = vst [vmem:[%s2233_s3 + $0x31] sm:$0x1] %v339_v60 }
 0x215   :  { %1476 = vmatpush1.bf16.msra.mxu0 %v1731_v20 }
 0x216   :  { %357 = vst [vmem:[%s2233_s3 + $0x39] sm:$0x1] %v341_v62  ;;  %1478 = vmatprep.subr.bf16.mxu0 %v1735_v21 }
 0x219   :  { %1480 = vmatpush1.bf16.msra.mxu0 %v1751_v26 }
 0x21a   :  { %1482 = vmatprep.subr.bf16.mxu0 %v1755_v27 }
 0x21d   :  { %1484 = vmatpush1.bf16.msra.mxu0 %v1771_v32 }
 0x21e   :  { %1486 = vmatprep.subr.bf16.mxu0 %v1775_v33 }
 0x221   :  { %1488 = vmatpush1.bf16.msra.mxu0 %v1791_v38 }
 0x222   :  { %1490 = vmatprep.subr.bf16.mxu0 %v1795_v39 }
 0x225   :  { %1492 = vmatpush1.bf16.msra.mxu0 %v1811_v44 }
 0x226   :  { %1494 = vmatprep.subr.bf16.mxu0 %v1815_v45 }
 0x229   :  { %1496 = vmatpush1.bf16.msra.mxu0 %v1825_v48 }
 0x22a   :  { %1530 = vmatprep.subr.bf16.mxu0 %v1681_v4 }
 0x2df   :  { %v427_v0 = vpop.f32.mrb[2].mxu0 }
 0x2e0   :  { %v432_v1 = vadd.f32 %v1295_v63, %v427_v0  ;;  %v429_v2 = vpop.f32.mrb[3].mxu0 }
 0x2e1   :  { %v433_v10 = vadd.f32 %v1296_v7, %v429_v2 }
 0x2e2   :  { %v1297_v5 = vmul.f32 -1.442695, %v432_v1 }
 0x2e4   :  { %1607 = vpow2.f32 %v1297_v5 }
 0x2e5   :  { %1609 = vtanh.f32 %v433_v10 }
 0x2ee   :  { %v1608_v11 = vpop.eup %1607 }
 0x2ef   :  { %v437_v12 = vadd.f32 1.0, %v1608_v11  ;;  %v1610_v13 = vpop.eup %1609  ;;  %v1309_v11 = vld [vmem:[%s2232_s0 + $0x40] sm:$0xff] }
 0x2f0   :  { %v441_v16 = vsub.f32 %v1610_v13, %v291_v49 }
 0x2f1   :  { %1611 = vrcp.f32 %v437_v12 }
 0x2fb   :  { %v1612_v17 = vpop.eup %1611 }
 0x2fc   :  { %v442_v18 = vmul.f32 %v1612_v17, %v441_v16 }
 0x2fe   :  { %v443_v19 = vadd.f32 %v442_v18, %v291_v49  ;;  %v1303_v49 = vld [vmem:[%s2232_s0 + $0x38] sm:$0xff]  ;;  %v1310_v18 = vld [vmem:[%s2232_s0 + $0x48] sm:$0xff] }
 0x300   :  { %v445_v22 = vcombine.high %v443_v19, %v443_v19  ;;  %v452_v23 = vrot.slane %v443_v19, %v1860_v6  ;;  %578 = vmatmul.mubr.f32.vlgmr.msra.gmra.mrb[2].mxu1 %v443_v19 }
 0x301   :  { %1500 = vmatpush1.bf16.msra.mxu1 %v1692_v8  ;;  %881 = vmatprep.mubr.f32.mxu1 %v1643_v3 }
 0x302   :  { %v459_v24 = vrot.slane %v445_v22, %v1860_v6  ;;  %v460_v25 = vcombine.high %v452_v23, %v452_v23  ;;  %v468_v28 = vrot.slane %v452_v23, %v1860_v6  ;;  %1298 = vst.sshfl [vmem:[%s2233_s3 + $0x2] sm:$0x1 pattern:$0x73625140] %v452_v23  ;;  %1502 = vmatprep.subr.bf16.mxu1 %v1694_v9 }
 0x304   :  { %v461_v29 = vcombine.high %v459_v24, %v459_v24  ;;  %v475_v30 = vrot.slane %v459_v24, %v1860_v6  ;;  %v482_v31 = vrot.slane %v460_v25, %v1860_v6  ;;  %v490_v34 = vcombine.high %v468_v28, %v468_v28  ;;  %1299 = vst.sshfl [vmem:[%s2233_s3 + $0xa] sm:$0x1 pattern:$0x73625140] %v460_v25 }
 0x305   :  { %1300 = vst.sshfl [vmem:[%s2233_s3 + $0x22] sm:$0x1 pattern:$0x73625140] %v459_v24  ;;  %1504 = vmatpush1.bf16.msra.mxu1 %v1711_v14 }
 0x306   :  { %v489_v35 = vrot.slane %v461_v29, %v1860_v6  ;;  %v491_v36 = vcombine.high %v475_v30, %v475_v30  ;;  %v492_v37 = vcombine.high %v482_v31, %v482_v31  ;;  %504 = vst [vmem:[%s2233_s3 + $0x12] sm:$0x1] %v490_v34  ;;  %1301 = vst.sshfl [vmem:[%s2233_s3 + $0x2a] sm:$0x1 pattern:$0x73625140] %v461_v29  ;;  %1506 = vmatprep.subr.bf16.mxu1 %v1715_v15 }
 0x308   :  { %v493_v40 = vcombine.high %v489_v35, %v489_v35  ;;  %505 = vst [vmem:[%s2233_s3 + $0x1a] sm:$0x1] %v492_v37  ;;  %508 = vst [vmem:[%s2233_s3 + $0x32] sm:$0x1] %v491_v36 }
 0x309   :  { %1508 = vmatpush1.bf16.msra.mxu1 %v1731_v20 }
 0x30a   :  { %509 = vst [vmem:[%s2233_s3 + $0x3a] sm:$0x1] %v493_v40  ;;  %1510 = vmatprep.subr.bf16.mxu1 %v1735_v21 }
 0x30d   :  { %1512 = vmatpush1.bf16.msra.mxu1 %v1751_v26 }
 0x30e   :  { %1514 = vmatprep.subr.bf16.mxu1 %v1755_v27 }
 0x311   :  { %1516 = vmatpush1.bf16.msra.mxu1 %v1771_v32 }
 0x312   :  { %1518 = vmatprep.subr.bf16.mxu1 %v1775_v33 }
 0x315   :  { %1520 = vmatpush1.bf16.msra.mxu1 %v1791_v38 }
 0x316   :  { %1522 = vmatprep.subr.bf16.mxu1 %v1795_v39 }
 0x319   :  { %1524 = vmatpush1.bf16.msra.mxu1 %v1811_v44 }
 0x31a   :  { %1526 = vmatprep.subr.bf16.mxu1 %v1815_v45 }
 0x31d   :  { %1528 = vmatpush1.bf16.msra.mxu1 %v1825_v48 }
 0x31e   :  { %1562 = vmatprep.subr.bf16.mxu1 %v1681_v4 }
 0x3d3   :  { %v579_v42 = vpop.f32.mrb[2].mxu1 }
 0x3d4   :  { %v584_v43 = vadd.f32 %v1302_v41, %v579_v42  ;;  %v581_v46 = vpop.f32.mrb[3].mxu1 }
 0x3d5   :  { %v585_v50 = vadd.f32 %v1303_v49, %v581_v46 }
 0x3d6   :  { %v1304_v47 = vmul.f32 -1.442695, %v584_v43 }
 0x3d8   :  { %1613 = vpow2.f32 %v1304_v47 }
 0x3d9   :  { %1615 = vtanh.f32 %v585_v50 }
 0x3e2   :  { %v1614_v51 = vpop.eup %1613 }
 0x3e3   :  { %v589_v52 = vadd.f32 1.0, %v1614_v51  ;;  %v1616_v53 = vpop.eup %1615 }
 0x3e4   :  { %v593_v4 = vsub.f32 %v1616_v53, %v443_v19 }
 0x3e5   :  { %1617 = vrcp.f32 %v589_v52 }
 0x3ef   :  { %v1618_v54 = vpop.eup %1617 }
 0x3f0   :  { %v594_v55 = vmul.f32 %v1618_v54, %v593_v4 }
 0x3f2   :  { %v595_v56 = vadd.f32 %v594_v55, %v443_v19 }
 0x3f4   :  { %v597_v57 = vcombine.high %v595_v56, %v595_v56  ;;  %v604_v58 = vrot.slane %v595_v56, %v1860_v6  ;;  %730 = vmatmul.mubr.f32.vlgmr.msra.gmra.mrb[4].mxu0 %v595_v56 }
 0x3f5   :  { %1532 = vmatpush1.bf16.msra.mxu0 %v1692_v8  ;;  %1033 = vmatprep.mubr.f32.mxu0 %v1643_v3 }
 0x3f6   :  { %v611_v59 = vrot.slane %v597_v57, %v1860_v6  ;;  %v612_v60 = vcombine.high %v604_v58, %v604_v58  ;;  %v620_v61 = vrot.slane %v604_v58, %v1860_v6  ;;  %1305 = vst.sshfl [vmem:[%s2233_s3 + $0x3] sm:$0x1 pattern:$0x73625140] %v604_v58  ;;  %1534 = vmatprep.subr.bf16.mxu0 %v1694_v9 }
 0x3f8   :  { %v613_v62 = vcombine.high %v611_v59, %v611_v59  ;;  %v627_v63 = vrot.slane %v611_v59, %v1860_v6  ;;  %v634_v0 = vrot.slane %v612_v60, %v1860_v6  ;;  %v642_v1 = vcombine.high %v620_v61, %v620_v61  ;;  %1306 = vst.sshfl [vmem:[%s2233_s3 + $0xb] sm:$0x1 pattern:$0x73625140] %v612_v60  ;;  %v1323_v61 = vld [vmem:[%s2232_s0 + $0x60] sm:$0xff] }
 0x3f9   :  { %1307 = vst.sshfl [vmem:[%s2233_s3 + $0x23] sm:$0x1 pattern:$0x73625140] %v611_v59  ;;  %1536 = vmatpush1.bf16.msra.mxu0 %v1711_v14 }
 0x3fa   :  { %v641_v2 = vrot.slane %v613_v62, %v1860_v6  ;;  %v643_v5 = vcombine.high %v627_v63, %v627_v63  ;;  %v644_v7 = vcombine.high %v634_v0, %v634_v0  ;;  %656 = vst [vmem:[%s2233_s3 + $0x13] sm:$0x1] %v642_v1  ;;  %1308 = vst.sshfl [vmem:[%s2233_s3 + $0x2b] sm:$0x1 pattern:$0x73625140] %v613_v62  ;;  %1538 = vmatprep.subr.bf16.mxu0 %v1715_v15 }
 0x3fc   :  { %v645_v10 = vcombine.high %v641_v2, %v641_v2  ;;  %657 = vst [vmem:[%s2233_s3 + $0x1b] sm:$0x1] %v644_v7  ;;  %660 = vst [vmem:[%s2233_s3 + $0x33] sm:$0x1] %v643_v5  ;;  %v1324_v2 = vld [vmem:[%s2232_s0 + $0x68] sm:$0xff] }
 0x3fd   :  { %1540 = vmatpush1.bf16.msra.mxu0 %v1731_v20 }
 0x3fe   :  { %661 = vst [vmem:[%s2233_s3 + $0x3b] sm:$0x1] %v645_v10  ;;  %1542 = vmatprep.subr.bf16.mxu0 %v1735_v21 }
 0x401   :  { %1544 = vmatpush1.bf16.msra.mxu0 %v1751_v26 }
 0x402   :  { %1546 = vmatprep.subr.bf16.mxu0 %v1755_v27 }
 0x405   :  { %1548 = vmatpush1.bf16.msra.mxu0 %v1771_v32 }
 0x406   :  { %1550 = vmatprep.subr.bf16.mxu0 %v1775_v33 }
 0x409   :  { %1552 = vmatpush1.bf16.msra.mxu0 %v1791_v38 }
 0x40a   :  { %1554 = vmatprep.subr.bf16.mxu0 %v1795_v39 }
 0x40d   :  { %1556 = vmatpush1.bf16.msra.mxu0 %v1811_v44 }
 0x40e   :  { %1558 = vmatprep.subr.bf16.mxu0 %v1815_v45 }
 0x411   :  { %1560 = vmatpush1.bf16.msra.mxu0 %v1825_v48 }
 0x4c7   :  { %v731_v12 = vpop.f32.mrb[4].mxu0 }
 0x4c8   :  { %v736_v13 = vadd.f32 %v1309_v11, %v731_v12  ;;  %v733_v16 = vpop.f32.mrb[5].mxu0 }
 0x4c9   :  { %v737_v19 = vadd.f32 %v1310_v18, %v733_v16 }
 0x4ca   :  { %v1311_v17 = vmul.f32 -1.442695, %v736_v13 }
 0x4cc   :  { %1619 = vpow2.f32 %v1311_v17 }
 0x4cd   :  { %1621 = vtanh.f32 %v737_v19 }
 0x4d6   :  { %v1620_v22 = vpop.eup %1619 }
 0x4d7   :  { %v741_v23 = vadd.f32 1.0, %v1620_v22  ;;  %v1622_v24 = vpop.eup %1621 }
 0x4d8   :  { %v745_v25 = vsub.f32 %v1622_v24, %v595_v56 }
 0x4d9   :  { %1623 = vrcp.f32 %v741_v23 }
 0x4e3   :  { %v1624_v28 = vpop.eup %1623 }
 0x4e4   :  { %v746_v29 = vmul.f32 %v1624_v28, %v745_v25 }
 0x4e6   :  { %v747_v30 = vadd.f32 %v746_v29, %v595_v56 }
 0x4e8   :  { %v749_v31 = vcombine.high %v747_v30, %v747_v30  ;;  %v756_v34 = vrot.slane %v747_v30, %v1860_v6  ;;  %882 = vmatmul.mubr.f32.vlgmr.msra.gmra.mrb[4].mxu1 %v747_v30 }
 0x4e9   :  { %1564 = vmatpush1.bf16.msra.mxu1 %v1692_v8  ;;  %1185 = vmatprep.mubr.f32.mxu1 %v1643_v3 }
 0x4ea   :  { %v763_v35 = vrot.slane %v749_v31, %v1860_v6  ;;  %v764_v36 = vcombine.high %v756_v34, %v756_v34  ;;  %v772_v37 = vrot.slane %v756_v34, %v1860_v6  ;;  %1312 = vst.sshfl [vmem:[%s2233_s3 + $0x4] sm:$0x1 pattern:$0x73625140] %v756_v34  ;;  %1566 = vmatprep.subr.bf16.mxu1 %v1694_v9 }
 0x4ec   :  { %v765_v40 = vcombine.high %v763_v35, %v763_v35  ;;  %v779_v41 = vrot.slane %v763_v35, %v1860_v6  ;;  %v786_v42 = vrot.slane %v764_v36, %v1860_v6  ;;  %v794_v43 = vcombine.high %v772_v37, %v772_v37  ;;  %1313 = vst.sshfl [vmem:[%s2233_s3 + $0xc] sm:$0x1 pattern:$0x73625140] %v764_v36  ;;  %v1330_v37 = vld [vmem:[%s2232_s0 + $0x70] sm:$0xff] }
 0x4ed   :  { %1314 = vst.sshfl [vmem:[%s2233_s3 + $0x24] sm:$0x1 pattern:$0x73625140] %v763_v35  ;;  %1568 = vmatpush1.bf16.msra.mxu1 %v1711_v14  ;;  %v1316_v14 = vld [vmem:[%s2232_s0 + $0x50] sm:$0xff] }
 0x4ee   :  { %v793_v3 = vrot.slane %v765_v40, %v1860_v6  ;;  %v795_v8 = vcombine.high %v779_v41, %v779_v41  ;;  %v796_v9 = vcombine.high %v786_v42, %v786_v42  ;;  %808 = vst [vmem:[%s2233_s3 + $0x14] sm:$0x1] %v794_v43  ;;  %1315 = vst.sshfl [vmem:[%s2233_s3 + $0x2c] sm:$0x1 pattern:$0x73625140] %v765_v40  ;;  %1570 = vmatprep.subr.bf16.mxu1 %v1715_v15 }
 0x4f0   :  { %v797_v46 = vcombine.high %v793_v3, %v793_v3  ;;  %809 = vst [vmem:[%s2233_s3 + $0x1c] sm:$0x1] %v796_v9  ;;  %812 = vst [vmem:[%s2233_s3 + $0x34] sm:$0x1] %v795_v8  ;;  %v1331_v3 = vld [vmem:[%s2232_s0 + $0x78] sm:$0xff] }
 0x4f1   :  { %1572 = vmatpush1.bf16.msra.mxu1 %v1731_v20 }
 0x4f2   :  { %813 = vst [vmem:[%s2233_s3 + $0x3c] sm:$0x1] %v797_v46  ;;  %1574 = vmatprep.subr.bf16.mxu1 %v1735_v21 }
 0x4f5   :  { %1576 = vmatpush1.bf16.msra.mxu1 %v1751_v26 }
 0x4f6   :  { %1578 = vmatprep.subr.bf16.mxu1 %v1755_v27  ;;  %v1317_v27 = vld [vmem:[%s2232_s0 + $0x58] sm:$0xff] }
 0x4f9   :  { %1580 = vmatpush1.bf16.msra.mxu1 %v1771_v32 }
 0x4fa   :  { %1582 = vmatprep.subr.bf16.mxu1 %v1775_v33 }
 0x4fd   :  { %1584 = vmatpush1.bf16.msra.mxu1 %v1791_v38 }
 0x4fe   :  { %1586 = vmatprep.subr.bf16.mxu1 %v1795_v39 }
 0x501   :  { %1588 = vmatpush1.bf16.msra.mxu1 %v1811_v44 }
 0x502   :  { %1590 = vmatprep.subr.bf16.mxu1 %v1815_v45 }
 0x505   :  { %1592 = vmatpush1.bf16.msra.mxu1 %v1825_v48 }
 0x5bb   :  { %v883_v15 = vpop.f32.mrb[4].mxu1 }
 0x5bc   :  { %v888_v20 = vadd.f32 %v1316_v14, %v883_v15  ;;  %v885_v21 = vpop.f32.mrb[5].mxu1 }
 0x5bd   :  { %v889_v32 = vadd.f32 %v1317_v27, %v885_v21 }
 0x5be   :  { %v1318_v26 = vmul.f32 -1.442695, %v888_v20 }
 0x5c0   :  { %1625 = vpow2.f32 %v1318_v26 }
 0x5c1   :  { %1627 = vtanh.f32 %v889_v32 }
 0x5ca   :  { %v1626_v33 = vpop.eup %1625 }
 0x5cb   :  { %v893_v38 = vadd.f32 1.0, %v1626_v33  ;;  %v1628_v39 = vpop.eup %1627 }
 0x5cc   :  { %v897_v44 = vsub.f32 %v1628_v39, %v747_v30 }
 0x5cd   :  { %1629 = vrcp.f32 %v893_v38 }
 0x5d7   :  { %v1630_v45 = vpop.eup %1629 }
 0x5d8   :  { %v898_v48 = vmul.f32 %v1630_v45, %v897_v44 }
 0x5da   :  { %v899_v47 = vadd.f32 %v898_v48, %v747_v30 }
 0x5dc   :  { %v901_v49 = vcombine.high %v899_v47, %v899_v47  ;;  %v908_v50 = vrot.slane %v899_v47, %v1860_v6  ;;  %1034 = vmatmul.mubr.f32.vlgmr.msra.gmra.mrb[6].mxu0 %v899_v47 }
 0x5de   :  { %v915_v51 = vrot.slane %v901_v49, %v1860_v6  ;;  %v916_v52 = vcombine.high %v908_v50, %v908_v50  ;;  %v924_v53 = vrot.slane %v908_v50, %v1860_v6  ;;  %1319 = vst.sshfl [vmem:[%s2233_s3 + $0x5] sm:$0x1 pattern:$0x73625140] %v908_v50 }
 0x5e0   :  { %v917_v4 = vcombine.high %v915_v51, %v915_v51  ;;  %v931_v54 = vrot.slane %v915_v51, %v1860_v6  ;;  %v938_v55 = vrot.slane %v916_v52, %v1860_v6  ;;  %v946_v56 = vcombine.high %v924_v53, %v924_v53  ;;  %1320 = vst.sshfl [vmem:[%s2233_s3 + $0xd] sm:$0x1 pattern:$0x73625140] %v916_v52 }
 0x5e1   :  { %1321 = vst.sshfl [vmem:[%s2233_s3 + $0x25] sm:$0x1 pattern:$0x73625140] %v915_v51 }
 0x5e2   :  { %v945_v57 = vrot.slane %v917_v4, %v1860_v6  ;;  %v947_v58 = vcombine.high %v931_v54, %v931_v54  ;;  %v948_v59 = vcombine.high %v938_v55, %v938_v55  ;;  %960 = vst [vmem:[%s2233_s3 + $0x15] sm:$0x1] %v946_v56  ;;  %1322 = vst.sshfl [vmem:[%s2233_s3 + $0x2d] sm:$0x1 pattern:$0x73625140] %v917_v4 }
 0x5e4   :  { %v949_v60 = vcombine.high %v945_v57, %v945_v57  ;;  %961 = vst [vmem:[%s2233_s3 + $0x1d] sm:$0x1] %v948_v59  ;;  %964 = vst [vmem:[%s2233_s3 + $0x35] sm:$0x1] %v947_v58 }
 0x5e6   :  { %965 = vst [vmem:[%s2233_s3 + $0x3d] sm:$0x1] %v949_v60 }
 0x6af   :  { %v1035_v62 = vpop.f32.mrb[6].mxu0 }
 0x6b0   :  { %v1040_v63 = vadd.f32 %v1323_v61, %v1035_v62  ;;  %v1037_v0 = vpop.f32.mrb[7].mxu0 }
 0x6b1   :  { %v1041_v5 = vadd.f32 %v1324_v2, %v1037_v0 }
 0x6b2   :  { %v1325_v1 = vmul.f32 -1.442695, %v1040_v63 }
 0x6b4   :  { %1631 = vpow2.f32 %v1325_v1 }
 0x6b5   :  { %1633 = vtanh.f32 %v1041_v5 }
 0x6be   :  { %v1632_v7 = vpop.eup %1631 }
 0x6bf   :  { %v1045_v10 = vadd.f32 1.0, %v1632_v7  ;;  %v1634_v11 = vpop.eup %1633 }
 0x6c0   :  { %v1049_v12 = vsub.f32 %v1634_v11, %v899_v47 }
 0x6c1   :  { %1635 = vrcp.f32 %v1045_v10 }
 0x6cb   :  { %v1636_v13 = vpop.eup %1635 }
 0x6cc   :  { %v1050_v16 = vmul.f32 %v1636_v13, %v1049_v12 }
 0x6ce   :  { %v1051_v17 = vadd.f32 %v1050_v16, %v899_v47 }
 0x6d0   :  { %v1053_v18 = vcombine.high %v1051_v17, %v1051_v17  ;;  %v1060_v19 = vrot.slane %v1051_v17, %v1860_v6  ;;  %1186 = vmatmul.mubr.f32.vlgmr.msra.gmra.mrb[6].mxu1 %v1051_v17 }
 0x6d2   :  { %v1067_v22 = vrot.slane %v1053_v18, %v1860_v6  ;;  %v1068_v23 = vcombine.high %v1060_v19, %v1060_v19  ;;  %v1076_v24 = vrot.slane %v1060_v19, %v1860_v6  ;;  %1326 = vst.sshfl [vmem:[%s2233_s3 + $0x6] sm:$0x1 pattern:$0x73625140] %v1060_v19 }
 0x6d4   :  { %v1069_v25 = vcombine.high %v1067_v22, %v1067_v22  ;;  %v1083_v28 = vrot.slane %v1067_v22, %v1860_v6  ;;  %v1090_v29 = vrot.slane %v1068_v23, %v1860_v6  ;;  %v1098_v30 = vcombine.high %v1076_v24, %v1076_v24  ;;  %1327 = vst.sshfl [vmem:[%s2233_s3 + $0xe] sm:$0x1 pattern:$0x73625140] %v1068_v23 }
 0x6d5   :  { %1328 = vst.sshfl [vmem:[%s2233_s3 + $0x26] sm:$0x1 pattern:$0x73625140] %v1067_v22 }
 0x6d6   :  { %v1097_v31 = vrot.slane %v1069_v25, %v1860_v6  ;;  %v1099_v34 = vcombine.high %v1083_v28, %v1083_v28  ;;  %v1100_v35 = vcombine.high %v1090_v29, %v1090_v29  ;;  %1112 = vst [vmem:[%s2233_s3 + $0x16] sm:$0x1] %v1098_v30  ;;  %1329 = vst.sshfl [vmem:[%s2233_s3 + $0x2e] sm:$0x1 pattern:$0x73625140] %v1069_v25 }
 0x6d8   :  { %v1101_v36 = vcombine.high %v1097_v31, %v1097_v31  ;;  %1113 = vst [vmem:[%s2233_s3 + $0x1e] sm:$0x1] %v1100_v35  ;;  %1116 = vst [vmem:[%s2233_s3 + $0x36] sm:$0x1] %v1099_v34 }
 0x6da   :  { %1117 = vst [vmem:[%s2233_s3 + $0x3e] sm:$0x1] %v1101_v36 }
 0x7a3   :  { %v1187_v40 = vpop.f32.mrb[6].mxu1 }
 0x7a4   :  { %v1192_v41 = vadd.f32 %v1330_v37, %v1187_v40  ;;  %v1189_v42 = vpop.f32.mrb[7].mxu1 }
 0x7a5   :  { %v1193_v8 = vadd.f32 %v1331_v3, %v1189_v42 }
 0x7a6   :  { %v1332_v43 = vmul.f32 -1.442695, %v1192_v41 }
 0x7a8   :  { %1637 = vpow2.f32 %v1332_v43 }
 0x7a9   :  { %1639 = vtanh.f32 %v1193_v8 }
 0x7b2   :  { %v1638_v9 = vpop.eup %1637 }
 0x7b3   :  { %v1197_v46 = vadd.f32 1.0, %v1638_v9  ;;  %v1640_v14 = vpop.eup %1639 }
 0x7b4   :  { %v1201_v15 = vsub.f32 %v1640_v14, %v1051_v17 }
 0x7b5   :  { %1641 = vrcp.f32 %v1197_v46 }
 0x7bf   :  { %v1642_v20 = vpop.eup %1641 }
 0x7c0   :  { %v1202_v21 = vmul.f32 %v1642_v20, %v1201_v15 }
 0x7c2   :  { %v1203_v26 = vadd.f32 %v1202_v21, %v1051_v17 }
 0x7c4   :  { %v1205_v27 = vcombine.high %v1203_v26, %v1203_v26  ;;  %v1212_v32 = vrot.slane %v1203_v26, %v1860_v6  ;;  %1274 = vst [vmem:[%s2234_s4] sm:$0xff] %v1203_v26 }
 0x7c6   :  { %v1219_v33 = vrot.slane %v1205_v27, %v1860_v6  ;;  %v1220_v38 = vcombine.high %v1212_v32, %v1212_v32  ;;  %v1228_v39 = vrot.slane %v1212_v32, %v1860_v6  ;;  %1333 = vst.sshfl [vmem:[%s2233_s3 + $0x7] sm:$0x1 pattern:$0x73625140] %v1212_v32 }
 0x7c8   :  { %v1221_v44 = vcombine.high %v1219_v33, %v1219_v33  ;;  %v1235_v45 = vrot.slane %v1219_v33, %v1860_v6  ;;  %v1242_v48 = vrot.slane %v1220_v38, %v1860_v6  ;;  %v1250_v47 = vcombine.high %v1228_v39, %v1228_v39  ;;  %1334 = vst.sshfl [vmem:[%s2233_s3 + $0xf] sm:$0x1 pattern:$0x73625140] %v1220_v38 }
 0x7c9   :  { %1335 = vst.sshfl [vmem:[%s2233_s3 + $0x27] sm:$0x1 pattern:$0x73625140] %v1219_v33 }
 0x7ca   :  { %v1249_v49 = vrot.slane %v1221_v44, %v1860_v6  ;;  %v1251_v50 = vcombine.high %v1235_v45, %v1235_v45  ;;  %v1252_v51 = vcombine.high %v1242_v48, %v1242_v48  ;;  %1264 = vst [vmem:[%s2233_s3 + $0x17] sm:$0x1] %v1250_v47  ;;  %1336 = vst.sshfl [vmem:[%s2233_s3 + $0x2f] sm:$0x1 pattern:$0x73625140] %v1221_v44 }
 0x7cc   :  { %v1253_v52 = vcombine.high %v1249_v49, %v1249_v49  ;;  %1265 = vst [vmem:[%s2233_s3 + $0x1f] sm:$0x1] %v1252_v51  ;;  %1268 = vst [vmem:[%s2233_s3 + $0x37] sm:$0x1] %v1251_v50 }
 0x7ce   :  { %1269 = vst [vmem:[%s2233_s3 + $0x3f] sm:$0x1] %v1253_v52 }

</bundles_post_ra>
